<compile_context>
chip_gen: v6e
topology: v6e:2x2x1
jax: 0.10.0
libtpu: 0.0.40
codegen_flags: <defaults>
</compile_context>

<pallas_src>
import functools

import jax
import jax.numpy as jnp
from jax.experimental import pallas as pl
from jax.experimental.pallas import tpu as pltpu


def _round_up(x, m):
    return ((x + m - 1) // m) * m


def _pick_bn(n):
    # Lane-dense output tiles: prefer large multiples of 128 that divide N,
    # otherwise take the whole row (fine for small / awkward N).
    for cand in (512, 256, 128):
        if n % cand == 0:
            return cand
    return n


def _mix_bits(idx_u32, seed_u32):
    """Stateless splitmix32-style hash -> per-element uint32 random bits.

    Pure jnp (VPU) ops only, so it lowers both on real TPUs and in interpret
    mode (unlike the stateful pltpu PRNG primitives).
    """
    z = idx_u32 ^ (seed_u32 * jnp.uint32(0x9E3779B9))
    z = (z ^ (z >> 16)) * jnp.uint32(0x7FEB352D)
    z = (z ^ (z >> 15)) * jnp.uint32(0x846CA68B)
    z = z ^ (z >> 16)
    return z


def _hidden_layer_kernel(seed_ref, x_ref, w_ref, b_ref, o_ref, *,
                         p, training, n_total, bm, bn, mxu_dtype):
    """One (bm, bn) output tile: y = dropout(relu(x @ W + b))."""
    x = x_ref[...]
    w = w_ref[...]
    if mxu_dtype is not None:
        x = x.astype(mxu_dtype)
        w = w.astype(mxu_dtype)
    # MXU matmul with f32 accumulation.
    y = jnp.dot(x, w, preferred_element_type=jnp.float32)
    y = y + b_ref[...].astype(jnp.float32)          # (bm, bn) + (1, bn)
    y = jnp.maximum(y, 0.0)                         # ReLU (VPU)

    if training and p > 0.0:
        # Inverted dropout: keep with prob (1 - p), scale kept values by
        # 1 / (1 - p) -- same semantics as torch.nn.Dropout(p) in train().
        # (Random stream differs from torch's RNG; distribution matches.)
        i = pl.program_id(0)
        j = pl.program_id(1)
        rows = jax.lax.broadcasted_iota(jnp.int32, y.shape, 0) + i * bm
        cols = jax.lax.broadcasted_iota(jnp.int32, y.shape, 1) + j * bn
        idx = (rows.astype(jnp.uint32) * jnp.uint32(n_total)
               + cols.astype(jnp.uint32))
        bits = _mix_bits(idx, seed_ref[0].astype(jnp.uint32))
        thresh = min(int(round(p * 2.0 ** 32)), 2 ** 32 - 1)  # clamp p -> 1.0
        keep = bits >= jnp.uint32(thresh)
        y = jnp.where(keep, y * (1.0 / (1.0 - p)), 0.0)

    o_ref[...] = y.astype(o_ref.dtype)


def hidden_layer(x, w, b, *, p=0.0, training=False, seed=0,
                 bm=256, bn=None, mxu_dtype=None):
    """x: (B, K), w: (K, N), b: (1, N) or (N,) -> (B, N)."""
    B, K = x.shape
    K2, N = w.shape
    assert K == K2
    assert 0.0 <= p < 1.0
    b = jnp.reshape(b, (1, N))

    # Batch tile: large (fills MXU rows, amortizes per-grid-step overhead)
    # but never bigger than the 8-aligned padded batch.
    bm_eff = _round_up(min(int(bm), _round_up(B, 8)), 8)
    B_pad = _round_up(B, bm_eff)
    if B_pad != B:
        x = jnp.pad(x, ((0, B_pad - B), (0, 0)))

    bn_eff = int(bn) if bn is not None else _pick_bn(N)
    assert N % bn_eff == 0

    # TODO(synk): for very large K (>= ~8K f32) add a third (innermost,
    # "arbitrary") K-reduction grid axis with a (bm, bn) f32 VMEM accumulator
    # so the x / W tiles stay within VMEM (esp. v7x's 64 MiB).

    grid = (B_pad // bm_eff, N // bn_eff)
    kern = functools.partial(
        _hidden_layer_kernel, p=float(p), training=bool(training),
        n_total=int(N), bm=bm_eff, bn=bn_eff, mxu_dtype=mxu_dtype)
    seed_arr = jnp.asarray([seed], dtype=jnp.int32)

    out = pl.pallas_call(
        kern,
        out_shape=jax.ShapeDtypeStruct((B_pad, N), x.dtype),
        grid_spec=pltpu.PrefetchScalarGridSpec(
            num_scalar_prefetch=1,              # seed lands in SMEM
            grid=grid,
            in_specs=[
                pl.BlockSpec((bm_eff, K), lambda i, j, seed: (i, 0)),
                pl.BlockSpec((K, bn_eff), lambda i, j, seed: (0, j)),
                pl.BlockSpec((1, bn_eff), lambda i, j, seed: (0, j)),
            ],
            out_specs=pl.BlockSpec((bm_eff, bn_eff), lambda i, j, seed: (i, j)),
        ),
        compiler_params=pltpu.CompilerParams(
            # Stateless per-element hash -> both axes safe to shard (v7x 2 TC).
            dimension_semantics=("parallel", "parallel"),
        ),
    )(seed_arr, x, w, b)
    return out[:B]


if __name__ == "__main__":
    # Small shapes consistent with the module: batch=8, input_dim=32, output_dim=32.
    B, IN_DIM, OUT_DIM = 8, 32, 32
    DROPOUT_P = 0.5
    SEED = 0

    key = jax.random.PRNGKey(0)
    kx, kw, kb = jax.random.split(key, 3)

    x = jax.random.normal(kx, (B, IN_DIM), dtype=jnp.float32)
    # Deterministic parameter init (uniform, like torch Linear's default bound).
    bound = 1.0 / float(IN_DIM) ** 0.5
    w = jax.random.uniform(kw, (IN_DIM, OUT_DIM), jnp.float32, -bound, bound)
    b = jax.random.uniform(kb, (1, OUT_DIM), jnp.float32, -bound, bound)

    ref = jnp.maximum(x @ w + b, 0.0)

    # --- eval-mode check (dropout is identity): compare vs. pure-JAX reference.
    out_eval = jax.block_until_ready(
        hidden_layer(x, w, b, p=DROPOUT_P, training=False))
    assert out_eval.shape == (B, OUT_DIM)
    assert jnp.allclose(out_eval, ref, atol=1e-5, rtol=1e-5)

    # --- training-mode check: reproduce the in-kernel hash mask host-side.
    out_train = jax.block_until_ready(
        hidden_layer(x, w, b, p=DROPOUT_P, training=True, seed=SEED))
    rows = jnp.arange(B, dtype=jnp.int32)[:, None]
    cols = jnp.arange(OUT_DIM, dtype=jnp.int32)[None, :]
    idx = rows.astype(jnp.uint32) * jnp.uint32(OUT_DIM) + cols.astype(jnp.uint32)
    bits = _mix_bits(idx, jnp.uint32(SEED))
    thresh = min(int(round(DROPOUT_P * 2.0 ** 32)), 2 ** 32 - 1)
    keep = bits >= jnp.uint32(thresh)
    expected = jnp.where(keep, ref / (1.0 - DROPOUT_P), 0.0)
    assert out_train.shape == (B, OUT_DIM)
    assert bool(jnp.all(jnp.isfinite(out_train)))
    assert jnp.allclose(out_train, expected, atol=1e-5, rtol=1e-5)

    print("KERNEL_OK")
</pallas_src>

<mosaic_0001>
module attributes {stable_mosaic.version = 11 : i64} {
  func.func @_hidden_layer_kernel(%arg0: i32, %arg1: i32, %arg2: memref<1xi32, #tpu.memory_space<smem>>, %arg3: memref<8x32xf32, #tpu.memory_space<vmem>>, %arg4: memref<32x32xf32, #tpu.memory_space<vmem>>, %arg5: memref<1x32xf32, #tpu.memory_space<vmem>>, %arg6: memref<8x32xf32, #tpu.memory_space<vmem>>) attributes {dimension_semantics = [#tpu.dimension_semantics<parallel>, #tpu.dimension_semantics<parallel>], iteration_bounds = array<i64: 1, 1>, scalar_prefetch = 1 : i64, scratch_operands = 0 : i64, tpu.core_type = #tpu.core_type<tc>, window_params = [{transform_indices = @transform_0, window_bounds = array<i64: 8, 32>}, {transform_indices = @transform_1, window_bounds = array<i64: 32, 32>}, {transform_indices = @transform_2, window_bounds = array<i64: 1, 32>}, {transform_indices = @transform_3, window_bounds = array<i64: 8, 32>}]} {
    %c0 = arith.constant 0 : index
    %c0_0 = arith.constant 0 : index
    %0 = vector.load %arg3[%c0, %c0_0] : memref<8x32xf32, #tpu.memory_space<vmem>>, vector<8x32xf32>
    %c0_1 = arith.constant 0 : index
    %c0_2 = arith.constant 0 : index
    %1 = vector.load %arg4[%c0_1, %c0_2] : memref<32x32xf32, #tpu.memory_space<vmem>>, vector<32x32xf32>
    %cst = arith.constant dense<0.000000e+00> : vector<8x32xf32>
    %2 = tpu.matmul %0, %1, %cst {dimension_numbers = #tpu.dot_dimension_numbers<[1], [0], [0], [1], [0, 0, 1, 1], [], []>} : vector<8x32xf32>, vector<32x32xf32>, vector<8x32xf32> -> vector<8x32xf32>
    %c0_3 = arith.constant 0 : index
    %c0_4 = arith.constant 0 : index
    %3 = vector.load %arg5[%c0_3, %c0_4] : memref<1x32xf32, #tpu.memory_space<vmem>>, vector<1x32xf32>
    %4 = vector.broadcast %3 : vector<1x32xf32> to vector<8x32xf32>
    %5 = arith.addf %2, %4 : vector<8x32xf32>
    %cst_5 = arith.constant 0.000000e+00 : f32
    %6 = vector.broadcast %cst_5 : f32 to vector<8x32xf32>
    %7 = arith.maximumf %5, %6 : vector<8x32xf32>
    %c0_6 = arith.constant 0 : index
    %c0_7 = arith.constant 0 : index
    %8 = vector.load %arg6[%c0_6, %c0_7] : memref<8x32xf32, #tpu.memory_space<vmem>>, vector<8x32xf32>
    tpu.vector_store %arg6[%c0_6, %c0_7], %7 {strides = array<i32>} : memref<8x32xf32, #tpu.memory_space<vmem>>, vector<8x32xf32>,
    return
  }
  func.func @transform_0(%arg0: i32, %arg1: i32, %arg2: memref<1xi32, #tpu.memory_space<smem>>) -> (i32, i32) {
    %c0_i32 = arith.constant 0 : i32
    %c0_i32_0 = arith.constant 0 : i32
    return %arg0, %c0_i32 : i32, i32
  }
  func.func @transform_1(%arg0: i32, %arg1: i32, %arg2: memref<1xi32, #tpu.memory_space<smem>>) -> (i32, i32) {
    %c0_i32 = arith.constant 0 : i32
    %c0_i32_0 = arith.constant 0 : i32
    return %c0_i32, %arg1 : i32, i32
  }
  func.func @transform_2(%arg0: i32, %arg1: i32, %arg2: memref<1xi32, #tpu.memory_space<smem>>) -> (i32, i32) {
    %c0_i32 = arith.constant 0 : i32
    %c0_i32_0 = arith.constant 0 : i32
    return %c0_i32, %arg1 : i32, i32
  }
  func.func @transform_3(%arg0: i32, %arg1: i32, %arg2: memref<1xi32, #tpu.memory_space<smem>>) -> (i32, i32) {
    %c0_i32 = arith.constant 0 : i32
    return %arg0, %arg1 : i32, i32
  }
}

</mosaic_0001>

<bundles_post_ra>
// kernel: tpu_custom_call.1
= control target key start
LH: loop header
LB: loop body
LE: loop exit
PB: predicated region body
PF: predicated region fallthrough
CT: control target
= control target key end

     0   :  { %10 = vsyncpa [#allocation5], 0  ;;  %s282_s0 = inlined_call_operand.<no memory space> [shape: s32[1], index: 0, kind: input, shape index: {}]   ;;  %s283_s1 = inlined_call_operand.hbm [shape: f32[8,32], index: 1, kind: input, shape index: {}]   ;;  %s284_s2 = inlined_call_operand.hbm [shape: f32[32,32], index: 2, kind: input, shape index: {}]   ;;  %s285_s3 = inlined_call_operand.vmem [shape: f32[1,32], index: 3, kind: input, shape index: {}]   ;;  %s286_s4 = inlined_call_operand.hbm [shape: f32[8,32], index: 4, kind: output, shape index: {}]  }
   0x1   :  { %11 = vsyncpa [#allocation8], 0 }
   0x2   :  { %12 = vsyncpa [#allocation6], 0  ;;  %s238_s15 = smov [#allocation4]   ;;  %s239_s17 = smov [#allocation7]  }
   0x3   :  { %s19_s16 = sshll.u32 %s238_s15, 4  ;;  %s28_s18 = sshll.u32 %s239_s17, 4  ;;  %s20_s16 = int_to_ptr.vmem [resolvable:$true] %s19_s16  ;;  %s29_s18 = int_to_ptr.vmem [resolvable:$true] %s28_s18 }
   0x4   :  { %s180_s0 = scalar_lea.vmem %s20_s16, 128  ;;  %p185_p1 = scmp.lt.s32.totalorder %s20_s16, %s20_s16 }
   0x5   :  { %p181_p0 = scmp.ne.s32.totalorder %s20_s16, %s180_s0  ;;  %p186_p2 = scmp.lt.s32.totalorder %s180_s0, %s180_s0 }
   0x7   :  { %p187_p3 = por %p186_p2, %p185_p1 }
   0x9   :  { %p188_p4 = pnand %p187_p3, %p181_p0 }
   0xb   :  { %191 = shalt.err (!%p188_p4)
}
   0xc   :  { %22 = dma.hbm_to_vmem [thread:$0]  %s283_s1, 128, %s20_s16, [#allocation5]  }
   0xd   :  { %s200_s21 = scalar_lea.vmem %s29_s18, 512  ;;  %p205_p6 = scmp.lt.s32.totalorder %s29_s18, %s29_s18 }
   0xe   :  { %p201_p5 = scmp.ne.s32.totalorder %s29_s18, %s200_s21  ;;  %p206_p7 = scmp.lt.s32.totalorder %s200_s21, %s200_s21 }
  0x10   :  { %p207_p8 = por %p206_p7, %p205_p6 }
  0x12   :  { %p208_p9 = pnand %p207_p8, %p201_p5 }
  0x14   :  { %211 = shalt.err (!%p208_p9)
}
  0x15   :  { %s240_s22 = smov 128   ;;  %s241_s23 = smov 8  }
  0x16   :  { %34 = dma.hbm_to_vmem [thread:$0]  %s284_s2, 512, %s29_s18, [#allocation8], %s240_s22, %s240_s22, %s241_s23  }
  0x17   :  { %232 = dma.done.wait [#allocation5], 128  }
  0x18   :  { %233 = vsyncadd [#allocation5], 4294967168 }
  0x19   :  { %234 = dma.done.wait [#allocation8], 512  }
  0x1a   :  { %235 = vsyncadd [#allocation8], 4294966784  ;;  %v242_v0 = vmov 0.0   ;;  %vm243_vm0 = vmmov 0   ;;  %v47_v1 = vld [vmem:[#allocation7 + $0x18] sm:$0xff]  ;;  %v46_v2 = vld [vmem:[#allocation7 + $0x10] sm:$0xff] }
  0x1b   :  { %154 = vmatprep.subr.mxu0 %v242_v0  ;;  %162 = vmatprep.mubr.msk.f32.mxu0 %vm243_vm0, %v242_v0  ;;  %v45_v3 = vld [vmem:[#allocation7 + $0x8] sm:$0xff]  ;;  %v44_v4 = vld [vmem:[#allocation7] sm:$0xff]  ;;  %v43_v5 = vld [vmem:[#allocation4] sm:$0xff]  ;;  %vm55_vm1 = vcmask 261120   ;;  %s244_s26 = smov [#allocation9]  }
  0x1c   :  { %155 = vmatpush3.msra.mxu0 %v47_v1  ;;  %v147_v6 = vld [vmem:[%s285_s3] ss:$0 sm:$0xff]  ;;  %s137_s27 = sshll.u32 %s244_s26, 4  ;;  %s138_s27 = int_to_ptr.vmem [resolvable:$true] %s137_s27 }
  0x1d   :  { %156 = vmatprep.subr.mxu0 %v242_v0  ;;  %s212_s28 = scalar_lea.vmem %s138_s27, 128  ;;  %p217_p11 = scmp.lt.s32.totalorder %s138_s27, %s138_s27 }
  0x1e   :  { %157 = vmatpush3.msra.mxu0 %v46_v2  ;;  %p213_p10 = scmp.ne.s32.totalorder %s138_s27, %s212_s28  ;;  %p218_p12 = scmp.lt.s32.totalorder %s212_s28, %s212_s28 }
  0x1f   :  { %158 = vmatprep.subr.mxu0 %v242_v0 }
  0x20   :  { %159 = vmatpush3.msra.mxu0 %v45_v3  ;;  %p219_p13 = por %p218_p12, %p217_p11 }
  0x21   :  { %160 = vmatprep.subr.mxu0 %v242_v0 }
  0x22   :  { %161 = vmatpush3.msra.mxu0 %v44_v4  ;;  %p220_p0 = pnand %p219_p13, %p213_p10 }
  0x23   :  { %163 = vmatmul.mubr.msk.f32.vlgmr.msra.gmra.mxu0 %vm55_vm1, %v43_v5 }
  0xe3   :  { %v125_v7 = vpop.f32.mrf.mxu0 }
  0xe4   :  { %v126_v8 = vadd.f32 %v147_v6, %v125_v7 }
  0xe5   :  { %v164_v9 = vpop.f32.mrf.mxu0 }
  0xe6   :  { %v129_v10 = vmax.f32 %v126_v8, 0.0 }
  0xe8   :  { %130 = vst.msk [vmem:[#allocation9] sm:$0xff] %vm55_vm1, %v129_v10 }
  0xe9   :  { %223 = shalt.err (!%p220_p0)
}
  0xea   :  { %140 = dma.vmem_to_hbm [thread:$0]  %s138_s27, 128, %s286_s4, [#allocation6]  }
  0xeb   :  { %236 = dma.done.wait [#allocation6], 128  }
  0xec   :  { %237 = vsyncadd [#allocation6], 4294967168 }
  0xed   :  { %144 = vsyncpa [#allocation5], 1 }
  0xee   :  { %145 = vsyncpa [#allocation8], 1 }
  0xef   :  { %146 = vsyncpa [#allocation6], 1 }

</bundles_post_ra>
